<compile_context>
chip_gen: v7x
topology: tpu7x:2x2x1
jax: 0.10.0
libtpu: 0.0.40
codegen_flags: <defaults>
</compile_context>

<pallas_src>
import functools

import jax
import jax.numpy as jnp
from jax.experimental import pallas as pl
from jax.experimental.pallas import tpu as pltpu

_VMEM_LIMIT = 64 * 1024 * 1024


# ---------------------------------------------------------------------------
# Tiling helpers
# ---------------------------------------------------------------------------
def _choose_row_tile(h, w, p, max_pixel_tile):
    """Rows per pixel tile: largest divisor rt of H such that the tile
    (rt * W lanes) fits the budget and satisfies the BlockSpec lane constraint
    (multiple of 128, or the whole image)."""
    for rt in range(h, 0, -1):
        tp = rt * w
        if h % rt == 0 and tp <= max_pixel_tile and (tp % 128 == 0 or tp == p):
            return rt
    # TODO(synk): images whose rows cannot be tiled to a 128-multiple would
    # need a padded / ragged last block; fall back to one full-image tile.
    return h


def _instance_specs(h, w, p, rt, tp, n_tiles):
    """BlockSpecs for (current, prev-halo, next-halo) views of the flattened
    (N, 1, P) instance map.  Halos are a single W-wide row when the lane
    constraint allows it, otherwise the whole neighbouring tile (its boundary
    row is sliced inside the kernel)."""
    cur = pl.BlockSpec((1, 1, tp), lambda b, r: (b, 0, r))
    if w % 128 == 0 or w == p:
        # block index along P in units of W == image row index
        prev = pl.BlockSpec(
            (1, 1, w), lambda b, r: (b, 0, jnp.maximum(r * rt - 1, 0)))
        nxt = pl.BlockSpec(
            (1, 1, w), lambda b, r: (b, 0, jnp.minimum((r + 1) * rt, h - 1)))
    else:  # small W (demo sizes): fetch the neighbouring tile instead
        prev = pl.BlockSpec(
            (1, 1, tp), lambda b, r: (b, 0, jnp.maximum(r - 1, 0)))
        nxt = pl.BlockSpec(
            (1, 1, tp), lambda b, r: (b, 0, jnp.minimum(r + 1, n_tiles - 1)))
    return [cur, prev, nxt]


# ---------------------------------------------------------------------------
# Edge-map math shared by the fused generator and the standalone get_edges
# ---------------------------------------------------------------------------
def _edge_channel(t_cur, prev_row, next_row, r, n_tiles, w):
    """Instance-boundary edges (torch get_edges) for one flattened row-tile.

    t_cur: (1, tp) current tile, tp = rows_per_tile * W (row-aligned).
    prev_row / next_row: (1, W) image rows directly above / below the tile;
    their contents are ignored for the first / last tile via the scalar masks.
    Returns a (1, tp) float32 0/1 edge map.
    """
    tp = t_cur.shape[1]
    idx = jax.lax.broadcasted_iota(jnp.int32, (1, tp), 1)
    col = idx % w                                  # column within the image row

    # left / right neighbours: 1-lane shifted copies.  Row-boundary wrap values
    # are killed by the column masks (tiles are row-aligned).
    left = jnp.concatenate([t_cur[:, :1], t_cur[:, :tp - 1]], axis=1)
    right = jnp.concatenate([t_cur[:, 1:], t_cur[:, tp - 1:]], axis=1)
    e = (t_cur != left) & (col > 0)
    e = e | ((t_cur != right) & (col < w - 1))

    # up / down neighbours: W-lane shifted copies with the halo row spliced in.
    if tp > w:
        up = jnp.concatenate([prev_row, t_cur[:, :tp - w]], axis=1)
        down = jnp.concatenate([t_cur[:, w:], next_row], axis=1)
    else:                                          # single-row tiles
        up, down = prev_row, next_row
    e = e | ((t_cur != up) & ((idx >= w) | (r > 0)))
    e = e | ((t_cur != down) & ((idx < tp - w) | (r < n_tiles - 1)))
    return e.astype(jnp.float32)


# ---------------------------------------------------------------------------
# Kernels
# ---------------------------------------------------------------------------
def _pix2pix_kernel(n_tiles, w, lab_ref, icur_ref, iprev_ref, inext_ref,
                    w1l_ref, w1e_ref, b1_ref, w2t_ref, b2_ref, o_ref, h_ref):
    """Fused preprocess_input + netG for one (batch, row-tile) grid step.

    Layout: channels on sublanes, pixels on lanes; the edge channel never
    leaves VMEM (split-W1 fusion instead of a HBM concat)."""
    r = pl.program_id(1)

    edge = _edge_channel(icur_ref[0], iprev_ref[0][:, -w:],
                         inext_ref[0][:, :w], r, n_tiles, w)   # (1, tp) f32

    # hidden = relu(W1_lab^T @ label + W1_edge^T * edge + b1)   (f32 accumulate)
    x = lab_ref[0].astype(w1l_ref.dtype)                       # cast in-kernel
    acc = jnp.dot(w1l_ref[...], x, preferred_element_type=jnp.float32)
    acc = acc + w1e_ref[...] * edge + b1_ref[...]
    h_ref[...] = jnp.maximum(acc, 0.0).astype(h_ref.dtype)     # bf16 VMEM stage

    # fake = tanh(W2^T @ hidden + b2), stored lane-dense in bf16
    y = jnp.dot(w2t_ref[...], h_ref[...], preferred_element_type=jnp.float32)
    o_ref[0] = jnp.tanh(y + b2_ref[...]).astype(o_ref.dtype)


def _edges_kernel(n_tiles, w, icur_ref, iprev_ref, inext_ref, e_ref):
    r = pl.program_id(1)
    e_ref[0] = _edge_channel(icur_ref[0], iprev_ref[0][:, -w:],
                             inext_ref[0][:, :w], r, n_tiles, w
                             ).astype(e_ref.dtype)


# ---------------------------------------------------------------------------
# Standalone get_edges (preprocess_input parity / debugging; the forward path
# computes the same thing fused inside the generator kernel).
# ---------------------------------------------------------------------------
def get_edges(inst_map, *, max_pixel_tile=8192, out_dtype=jnp.float32):
    n, c, h, w = inst_map.shape
    p = h * w
    rt = _choose_row_tile(h, w, p, max_pixel_tile)
    tp, n_tiles = rt * w, h // rt
    t = inst_map.reshape(n * c, 1, p).astype(jnp.float32)     # free view
    out = pl.pallas_call(
        functools.partial(_edges_kernel, n_tiles, w),
        out_shape=jax.ShapeDtypeStruct((n * c, 1, p), out_dtype),
        grid=(n * c, n_tiles),
        in_specs=_instance_specs(h, w, p, rt, tp, n_tiles),
        out_specs=pl.BlockSpec((1, 1, tp), lambda b, r: (b, 0, r)),
        compiler_params=pltpu.CompilerParams(
            dimension_semantics=("parallel", "parallel"),
            vmem_limit_bytes=_VMEM_LIMIT),
    )(t, t, t)
    return out.reshape(n, c, h, w)


# ---------------------------------------------------------------------------
# Pix2PixModel wrapper (inference mode, no_instance=False, use_vae=False)
# ---------------------------------------------------------------------------
class Pix2PixModelPallas:
    def __init__(self, label_nc, hidden, out_nc, key, *,
                 compute_dtype=jnp.bfloat16, max_pixel_tile=8192):
        self.label_nc, self.hidden, self.out_nc = label_nc, hidden, out_nc
        self.compute_dtype = compute_dtype
        self.max_pixel_tile = max_pixel_tile
        cin = label_nc + 1                            # + instance-edge channel
        k1, k2 = jax.random.split(key)
        w1 = jax.random.normal(k1, (cin, hidden), jnp.float32) / (cin ** 0.5)
        w2 = jax.random.normal(k2, (hidden, out_nc), jnp.float32) / (hidden ** 0.5)
        # Stored transposed (output channels on sublanes) and split so the edge
        # channel is fused into the first conv instead of concatenated in HBM.
        self.w1t_lab = jnp.asarray(w1[:label_nc].T, compute_dtype)  # (hid, label_nc)
        self.w1t_edge = jnp.asarray(w1[label_nc:].T, jnp.float32)   # (hid, 1)
        self.b1 = jnp.zeros((hidden, 1), jnp.float32)
        self.w2t = jnp.asarray(w2.T, compute_dtype)                 # (out_nc, hid)
        self.b2 = jnp.zeros((out_nc, 1), jnp.float32)

    # torch-parity helper (the fused forward path never materializes this).
    def preprocess_input(self, data):
        edge = get_edges(data["instance"], max_pixel_tile=self.max_pixel_tile)
        return jnp.concatenate([data["label"], edge], axis=1), data["image"]

    def generate_fake(self, label, instance):
        n, c, h, w = label.shape
        p = h * w
        rt = _choose_row_tile(h, w, p, self.max_pixel_tile)
        if n * (h // rt) < 2:             # keep both v7x TensorCores busy
            for cand in range(rt - 1, 0, -1):
                if h % cand == 0 and (cand * w) % 128 == 0:
                    rt = cand
                    break
        tp, n_tiles = rt * w, h // rt

        lab = label.reshape(n, c, p)                  # free views, no host casts
        inst = instance.reshape(n, 1, p).astype(jnp.float32)

        hid, out_nc = self.hidden, self.out_nc
        in_specs = (
            [pl.BlockSpec((1, c, tp), lambda b, r: (b, 0, r))]
            + _instance_specs(h, w, p, rt, tp, n_tiles)
            + [
                pl.BlockSpec((hid, c), lambda b, r: (0, 0)),
                pl.BlockSpec((hid, 1), lambda b, r: (0, 0)),
                pl.BlockSpec((hid, 1), lambda b, r: (0, 0)),
                pl.BlockSpec((out_nc, hid), lambda b, r: (0, 0)),
                pl.BlockSpec((out_nc, 1), lambda b, r: (0, 0)),
            ])
        out = pl.pallas_call(
            functools.partial(_pix2pix_kernel, n_tiles, w),
            out_shape=jax.ShapeDtypeStruct((n, out_nc, p), self.compute_dtype),
            grid=(n, n_tiles),
            in_specs=in_specs,
            out_specs=pl.BlockSpec((1, out_nc, tp), lambda b, r: (b, 0, r)),
            scratch_shapes=[pltpu.VMEM((hid, tp), self.compute_dtype)],
            compiler_params=pltpu.CompilerParams(
                dimension_semantics=("parallel", "parallel"),
                vmem_limit_bytes=_VMEM_LIMIT),
        )(lab, inst, inst, inst, self.w1t_lab, self.w1t_edge, self.b1,
          self.w2t, self.b2)
        return out.reshape(n, out_nc, h, w)           # NCHW fake image (bf16)

    def forward(self, data, mode):
        if mode == "inference":
            return self.generate_fake(data["label"], data["instance"])
        if mode in ("generator", "discriminator", "encode_only"):
            # TODO(synk): these modes need external networks.define_D/E and the
            # GAN/VGG/KLD/Feat losses; not representable from this module alone.
            raise NotImplementedError(f"mode '{mode}' requires external networks")
        raise ValueError("|mode| is invalid")


# ---------------------------------------------------------------------------
# Pure-JAX references for correctness checks
# ---------------------------------------------------------------------------
def _ref_get_edges(t):
    edge = jnp.zeros(t.shape, dtype=bool)
    dw = t[:, :, :, 1:] != t[:, :, :, :-1]
    edge = edge.at[:, :, :, 1:].set(edge[:, :, :, 1:] | dw)
    edge = edge.at[:, :, :, :-1].set(edge[:, :, :, :-1] | dw)
    dh = t[:, :, 1:, :] != t[:, :, :-1, :]
    edge = edge.at[:, :, 1:, :].set(edge[:, :, 1:, :] | dh)
    edge = edge.at[:, :, :-1, :].set(edge[:, :, :-1, :] | dh)
    return edge.astype(jnp.float32)


def _ref_forward(model, data):
    label = data["label"].astype(jnp.float32)
    edge = _ref_get_edges(data["instance"].astype(jnp.float32))
    sem = jnp.concatenate([label, edge], axis=1)                # (N, cin, H, W)
    n, cin, hh, ww = sem.shape
    x = sem.reshape(n, cin, hh * ww)
    w1t = jnp.concatenate([model.w1t_lab.astype(jnp.float32),
                           model.w1t_edge], axis=1)             # (hid, cin)
    hp = jnp.einsum("hc,ncp->nhp", w1t, x,
                    precision=jax.lax.Precision.HIGHEST)
    hp = jnp.maximum(hp + model.b1[None], 0.0)
    y = jnp.einsum("oh,nhp->nop", model.w2t.astype(jnp.float32), hp,
                   precision=jax.lax.Precision.HIGHEST)
    y = jnp.tanh(y + model.b2[None])
    return y.reshape(n, model.out_nc, hh, ww)


if __name__ == "__main__":
    key = jax.random.PRNGKey(0)
    k_lab, k_inst, k_img, k_par = jax.random.split(key, 4)

    N, LABEL_NC, H, W = 2, 4, 16, 16
    HIDDEN, OUT_NC = 32, 3

    classes = jax.random.randint(k_lab, (N, H, W), 0, LABEL_NC)
    label = jax.nn.one_hot(classes, LABEL_NC, axis=1).astype(jnp.float32)
    instance = jax.random.randint(k_inst, (N, 1, H, W), 0, 3).astype(jnp.float32)
    image = jax.random.normal(k_img, (N, 3, H, W), jnp.float32)
    data = {"label": label, "instance": instance, "image": image}

    model = Pix2PixModelPallas(LABEL_NC, HIDDEN, OUT_NC, k_par)
    ref = _ref_forward(model, data)

    # Default tiling: one full-image pixel tile per batch element.
    fake = jax.block_until_ready(model.forward(data, mode="inference"))
    assert fake.shape == (N, OUT_NC, H, W) and fake.dtype == model.compute_dtype
    err = float(jnp.max(jnp.abs(fake.astype(jnp.float32) - ref)))
    assert jnp.allclose(fake.astype(jnp.float32), ref, atol=3e-2, rtol=3e-2), err

    # Multi-tile path (two 8-row tiles per image): exercises the cross-tile
    # halo rows of the fused edge computation.
    model_mt = Pix2PixModelPallas(LABEL_NC, HIDDEN, OUT_NC, k_par,
                                  max_pixel_tile=128)
    fake_mt = jax.block_until_ready(model_mt.forward(data, mode="inference"))
    err_mt = float(jnp.max(jnp.abs(fake_mt.astype(jnp.float32) - ref)))
    assert jnp.allclose(fake_mt.astype(jnp.float32), ref,
                        atol=3e-2, rtol=3e-2), err_mt

    # Standalone get_edges (preprocess_input parity) is exact, with and without
    # row tiling (tiled case checks the halo logic bit-exactly).
    edge_ref = _ref_get_edges(instance)
    assert jnp.array_equal(get_edges(instance), edge_ref)
    assert jnp.array_equal(get_edges(instance, max_pixel_tile=128), edge_ref)

    print("KERNEL_OK")
</pallas_src>

<mosaic_0001>
module attributes {stable_mosaic.version = 11 : i64} {
  func.func @_pix2pix_kernel(%arg0: i32, %arg1: i32, %arg2: memref<1x4x256xf32, #tpu.memory_space<vmem>>, %arg3: memref<1x1x256xf32, #tpu.memory_space<vmem>>, %arg4: memref<1x1x256xf32, #tpu.memory_space<vmem>>, %arg5: memref<1x1x256xf32, #tpu.memory_space<vmem>>, %arg6: memref<32x4xbf16, #tpu.memory_space<vmem>>, %arg7: memref<32x1xf32, #tpu.memory_space<vmem>>, %arg8: memref<32x1xf32, #tpu.memory_space<vmem>>, %arg9: memref<3x32xbf16, #tpu.memory_space<vmem>>, %arg10: memref<3x1xf32, #tpu.memory_space<vmem>>, %arg11: memref<1x3x256xbf16, #tpu.memory_space<vmem>>, %arg12: memref<32x256xbf16, #tpu.memory_space<vmem>>) attributes {dimension_semantics = [#tpu.dimension_semantics<parallel>, #tpu.dimension_semantics<parallel>], iteration_bounds = array<i64: 2, 1>, scalar_prefetch = 0 : i64, scratch_operands = 1 : i64, tpu.core_type = #tpu.core_type<tc>, window_params = [{transform_indices = @transform_0, window_bounds = array<i64: 1, 4, 256>}, {transform_indices = @transform_1, window_bounds = array<i64: 1, 1, 256>}, {transform_indices = @transform_2, window_bounds = array<i64: 1, 1, 256>}, {transform_indices = @transform_3, window_bounds = array<i64: 1, 1, 256>}, {pipeline_mode = #tpu.pipeline_mode<synchronous>, transform_indices = @transform_4, window_bounds = array<i64: 32, 4>}, {pipeline_mode = #tpu.pipeline_mode<synchronous>, transform_indices = @transform_5, window_bounds = array<i64: 32, 1>}, {pipeline_mode = #tpu.pipeline_mode<synchronous>, transform_indices = @transform_6, window_bounds = array<i64: 32, 1>}, {pipeline_mode = #tpu.pipeline_mode<synchronous>, transform_indices = @transform_7, window_bounds = array<i64: 3, 32>}, {pipeline_mode = #tpu.pipeline_mode<synchronous>, transform_indices = @transform_8, window_bounds = array<i64: 3, 1>}, {transform_indices = @transform_9, window_bounds = array<i64: 1, 3, 256>}]} {
    %c0 = arith.constant 0 : index
    %c0_0 = arith.constant 0 : index
    %c0_1 = arith.constant 0 : index
    %0 = vector.load %arg3[%c0, %c0_0, %c0_1] : memref<1x1x256xf32, #tpu.memory_space<vmem>>, vector<1x1x256xf32>
    %1 = vector.shape_cast %0 : vector<1x1x256xf32> to vector<1x256xf32>
    %c0_2 = arith.constant 0 : index
    %c0_3 = arith.constant 0 : index
    %c0_4 = arith.constant 0 : index
    %2 = vector.load %arg4[%c0_2, %c0_3, %c0_4] : memref<1x1x256xf32, #tpu.memory_space<vmem>>, vector<1x1x256xf32>
    %3 = vector.shape_cast %2 : vector<1x1x256xf32> to vector<1x256xf32>
    %4 = vector.extract_strided_slice %3 {offsets = [0, 240], sizes = [1, 16], strides = [1, 1]} : vector<1x256xf32> to vector<1x16xf32>
    %c0_5 = arith.constant 0 : index
    %c0_6 = arith.constant 0 : index
    %c0_7 = arith.constant 0 : index
    %5 = vector.load %arg5[%c0_5, %c0_6, %c0_7] : memref<1x1x256xf32, #tpu.memory_space<vmem>>, vector<1x1x256xf32>
    %6 = vector.shape_cast %5 : vector<1x1x256xf32> to vector<1x256xf32>
    %7 = vector.extract_strided_slice %6 {offsets = [0, 0], sizes = [1, 16], strides = [1, 1]} : vector<1x256xf32> to vector<1x16xf32>
    %8 = tpu.iota {dimensions = array<i32: 1>} : vector<1x256xi32>
    %c16_i32 = arith.constant 16 : i32
    %c0_i32 = arith.constant 0 : i32
    %9 = arith.cmpi eq, %c16_i32, %c0_i32 : i32
    %c1_i32 = arith.constant 1 : i32
    %10 = arith.select %9, %c1_i32, %c16_i32 : i32
    %11 = vector.broadcast %10 : i32 to vector<1x256xi32>
    %12 = arith.remsi %8, %11 : vector<1x256xi32>
    %c0_i32_8 = arith.constant 0 : i32
    %13 = vector.broadcast %c0_i32_8 : i32 to vector<1x256xi32>
    %14 = arith.cmpi ne, %12, %13 : vector<1x256xi32>
    %c0_i32_9 = arith.constant 0 : i32
    %15 = vector.broadcast %c0_i32_9 : i32 to vector<1x256xi32>
    %16 = arith.cmpi slt, %12, %15 : vector<1x256xi32>
    %c0_i32_10 = arith.constant 0 : i32
    %17 = arith.cmpi slt, %10, %c0_i32_10 : i32
    %18 = vector.broadcast %17 : i1 to vector<1x256xi1>
    %19 = vector.broadcast %18 : vector<1x256xi1> to vector<1x256xi1>
    %20 = arith.xori %16, %19 : vector<1x256xi1>
    %21 = arith.andi %20, %14 : vector<1x256xi1>
    %22 = vector.broadcast %10 : i32 to vector<1x256xi32>
    %23 = arith.addi %12, %22 : vector<1x256xi32>
    %24 = arith.select %21, %23, %12 : vector<1x256xi1>, vector<1x256xi32>
    %25 = vector.extract_strided_slice %1 {offsets = [0, 0], sizes = [1, 1], strides = [1, 1]} : vector<1x256xf32> to vector<1x1xf32>
    %26 = vector.extract_strided_slice %1 {offsets = [0, 0], sizes = [1, 255], strides = [1, 1]} : vector<1x256xf32> to vector<1x255xf32>
    %27 = tpu.concatenate %25, %26 in 1 : vector<1x1xf32>, vector<1x255xf32> -> vector<1x256xf32>
    %28 = vector.extract_strided_slice %1 {offsets = [0, 1], sizes = [1, 255], strides = [1, 1]} : vector<1x256xf32> to vector<1x255xf32>
    %29 = vector.extract_strided_slice %1 {offsets = [0, 255], sizes = [1, 1], strides = [1, 1]} : vector<1x256xf32> to vector<1x1xf32>
    %30 = tpu.concatenate %28, %29 in 1 : vector<1x255xf32>, vector<1x1xf32> -> vector<1x256xf32>
    %31 = arith.cmpf one, %1, %27 : vector<1x256xf32>
    %c0_i32_11 = arith.constant 0 : i32
    %32 = vector.broadcast %c0_i32_11 : i32 to vector<1x256xi32>
    %33 = arith.cmpi sgt, %24, %32 : vector<1x256xi32>
    %34 = arith.andi %31, %33 : vector<1x256xi1>
    %35 = arith.cmpf one, %1, %30 : vector<1x256xf32>
    %c15_i32 = arith.constant 15 : i32
    %36 = vector.broadcast %c15_i32 : i32 to vector<1x256xi32>
    %37 = arith.cmpi slt, %24, %36 : vector<1x256xi32>
    %38 = arith.andi %35, %37 : vector<1x256xi1>
    %39 = arith.ori %34, %38 : vector<1x256xi1>
    %40 = vector.extract_strided_slice %1 {offsets = [0, 0], sizes = [1, 240], strides = [1, 1]} : vector<1x256xf32> to vector<1x240xf32>
    %41 = tpu.concatenate %4, %40 in 1 : vector<1x16xf32>, vector<1x240xf32> -> vector<1x256xf32>
    %42 = vector.extract_strided_slice %1 {offsets = [0, 16], sizes = [1, 240], strides = [1, 1]} : vector<1x256xf32> to vector<1x240xf32>
    %43 = tpu.concatenate %42, %7 in 1 : vector<1x240xf32>, vector<1x16xf32> -> vector<1x256xf32>
    %44 = arith.cmpf one, %1, %41 : vector<1x256xf32>
    %c16_i32_12 = arith.constant 16 : i32
    %45 = vector.broadcast %c16_i32_12 : i32 to vector<1x256xi32>
    %46 = arith.cmpi sge, %8, %45 : vector<1x256xi32>
    %c0_i32_13 = arith.constant 0 : i32
    %47 = arith.cmpi sgt, %arg1, %c0_i32_13 : i32
    %48 = vector.broadcast %47 : i1 to vector<1x256xi1>
    %49 = arith.ori %46, %48 : vector<1x256xi1>
    %50 = arith.andi %44, %49 : vector<1x256xi1>
    %51 = arith.ori %39, %50 : vector<1x256xi1>
    %52 = arith.cmpf one, %1, %43 : vector<1x256xf32>
    %c240_i32 = arith.constant 240 : i32
    %53 = vector.broadcast %c240_i32 : i32 to vector<1x256xi32>
    %54 = arith.cmpi slt, %8, %53 : vector<1x256xi32>
    %c0_i32_14 = arith.constant 0 : i32
    %55 = arith.cmpi slt, %arg1, %c0_i32_14 : i32
    %56 = vector.broadcast %55 : i1 to vector<1x256xi1>
    %57 = arith.ori %54, %56 : vector<1x256xi1>
    %58 = arith.andi %52, %57 : vector<1x256xi1>
    %59 = arith.ori %51, %58 : vector<1x256xi1>
    %60 = arith.extui %59 : vector<1x256xi1> to vector<1x256xi32>
    %61 = arith.sitofp %60 : vector<1x256xi32> to vector<1x256xf32>
    %c0_15 = arith.constant 0 : index
    %c0_16 = arith.constant 0 : index
    %c0_17 = arith.constant 0 : index
    %62 = vector.load %arg2[%c0_15, %c0_16, %c0_17] : memref<1x4x256xf32, #tpu.memory_space<vmem>>, vector<1x4x256xf32>
    %63 = vector.shape_cast %62 : vector<1x4x256xf32> to vector<4x256xf32>
    %64 = arith.truncf %63 : vector<4x256xf32> to vector<4x256xbf16>
    %c0_18 = arith.constant 0 : index
    %c0_19 = arith.constant 0 : index
    %65 = vector.load %arg6[%c0_18, %c0_19] : memref<32x4xbf16, #tpu.memory_space<vmem>>, vector<32x4xbf16>
    %cst = arith.constant dense<0.000000e+00> : vector<32x256xf32>
    %66 = tpu.matmul %65, %64, %cst {dimension_numbers = #tpu.dot_dimension_numbers<[1], [0], [0], [1], [0, 0, 1, 1], [], []>} : vector<32x4xbf16>, vector<4x256xbf16>, vector<32x256xf32> -> vector<32x256xf32>
    %c0_20 = arith.constant 0 : index
    %c0_21 = arith.constant 0 : index
    %67 = vector.load %arg7[%c0_20, %c0_21] : memref<32x1xf32, #tpu.memory_space<vmem>>, vector<32x1xf32>
    %68 = vector.broadcast %67 : vector<32x1xf32> to vector<32x256xf32>
    %69 = vector.broadcast %61 : vector<1x256xf32> to vector<32x256xf32>
    %70 = arith.mulf %68, %69 : vector<32x256xf32>
    %71 = arith.addf %66, %70 : vector<32x256xf32>
    %c0_22 = arith.constant 0 : index
    %c0_23 = arith.constant 0 : index
    %72 = vector.load %arg8[%c0_22, %c0_23] : memref<32x1xf32, #tpu.memory_space<vmem>>, vector<32x1xf32>
    %73 = vector.broadcast %72 : vector<32x1xf32> to vector<32x256xf32>
    %74 = arith.addf %71, %73 : vector<32x256xf32>
    %cst_24 = arith.constant 0.000000e+00 : f32
    %75 = vector.broadcast %cst_24 : f32 to vector<32x256xf32>
    %76 = arith.maximumf %74, %75 : vector<32x256xf32>
    %77 = arith.truncf %76 : vector<32x256xf32> to vector<32x256xbf16>
    %c0_25 = arith.constant 0 : index
    %c0_26 = arith.constant 0 : index
    %78 = vector.load %arg12[%c0_25, %c0_26] : memref<32x256xbf16, #tpu.memory_space<vmem>>, vector<32x256xbf16>
    tpu.vector_store %arg12[%c0_25, %c0_26], %77 {strides = array<i32>} : memref<32x256xbf16, #tpu.memory_space<vmem>>, vector<32x256xbf16>,
    %c0_27 = arith.constant 0 : index
    %c0_28 = arith.constant 0 : index
    %79 = vector.load %arg9[%c0_27, %c0_28] : memref<3x32xbf16, #tpu.memory_space<vmem>>, vector<3x32xbf16>
    %c0_29 = arith.constant 0 : index
    %c0_30 = arith.constant 0 : index
    %80 = vector.load %arg12[%c0_29, %c0_30] : memref<32x256xbf16, #tpu.memory_space<vmem>>, vector<32x256xbf16>
    %cst_31 = arith.constant dense<0.000000e+00> : vector<3x256xf32>
    %81 = tpu.matmul %79, %80, %cst_31 {dimension_numbers = #tpu.dot_dimension_numbers<[1], [0], [0], [1], [0, 0, 1, 1], [], []>} : vector<3x32xbf16>, vector<32x256xbf16>, vector<3x256xf32> -> vector<3x256xf32>
    %c0_32 = arith.constant 0 : index
    %c0_33 = arith.constant 0 : index
    %82 = vector.load %arg10[%c0_32, %c0_33] : memref<3x1xf32, #tpu.memory_space<vmem>>, vector<3x1xf32>
    %83 = vector.broadcast %82 : vector<3x1xf32> to vector<3x256xf32>
    %84 = arith.addf %81, %83 : vector<3x256xf32>
    %85 = math.tanh %84 : vector<3x256xf32>
    %86 = arith.truncf %85 : vector<3x256xf32> to vector<3x256xbf16>
    %c0_34 = arith.constant 0 : index
    %c0_35 = arith.constant 0 : index
    %c0_36 = arith.constant 0 : index
    %87 = vector.load %arg11[%c0_34, %c0_35, %c0_36] : memref<1x3x256xbf16, #tpu.memory_space<vmem>>, vector<1x3x256xbf16>
    %88 = vector.shape_cast %87 : vector<1x3x256xbf16> to vector<3x256xbf16>
    %89 = vector.shape_cast %86 : vector<3x256xbf16> to vector<1x3x256xbf16>
    tpu.vector_store %arg11[%c0_34, %c0_35, %c0_36], %89 {strides = array<i32>} : memref<1x3x256xbf16, #tpu.memory_space<vmem>>, vector<1x3x256xbf16>,
    return
  }
  func.func @transform_0(%arg0: i32, %arg1: i32) -> (i32, i32, i32) {
    %c0_i32 = arith.constant 0 : i32
    %c0_i32_0 = arith.constant 0 : i32
    return %arg0, %c0_i32, %arg1 : i32, i32, i32
  }
  func.func @transform_1(%arg0: i32, %arg1: i32) -> (i32, i32, i32) {
    %c0_i32 = arith.constant 0 : i32
    %c0_i32_0 = arith.constant 0 : i32
    return %arg0, %c0_i32, %arg1 : i32, i32, i32
  }
  func.func @transform_2(%arg0: i32, %arg1: i32) -> (i32, i32, i32) {
    %c1_i32 = arith.constant 1 : i32
    %0 = arith.subi %arg1, %c1_i32 : i32
    %c0_i32 = arith.constant 0 : i32
    %1 = arith.maxsi %0, %c0_i32 : i32
    %c0_i32_0 = arith.constant 0 : i32
    %c0_i32_1 = arith.constant 0 : i32
    return %arg0, %c0_i32_0, %1 : i32, i32, i32
  }
  func.func @transform_3(%arg0: i32, %arg1: i32) -> (i32, i32, i32) {
    %c1_i32 = arith.constant 1 : i32
    %0 = arith.addi %arg1, %c1_i32 : i32
    %c0_i32 = arith.constant 0 : i32
    %1 = arith.minsi %0, %c0_i32 : i32
    %c0_i32_0 = arith.constant 0 : i32
    %c0_i32_1 = arith.constant 0 : i32
    return %arg0, %c0_i32_0, %1 : i32, i32, i32
  }
  func.func @transform_4(%arg0: i32, %arg1: i32) -> (i32, i32) {
    %c0_i32 = arith.constant 0 : i32
    %c0_i32_0 = arith.constant 0 : i32
    %c0_i32_1 = arith.constant 0 : i32
    return %c0_i32, %c0_i32_0 : i32, i32
  }
  func.func @transform_5(%arg0: i32, %arg1: i32) -> (i32, i32) {
    %c0_i32 = arith.constant 0 : i32
    %c0_i32_0 = arith.constant 0 : i32
    %c0_i32_1 = arith.constant 0 : i32
    return %c0_i32, %c0_i32_0 : i32, i32
  }
  func.func @transform_6(%arg0: i32, %arg1: i32) -> (i32, i32) {
    %c0_i32 = arith.constant 0 : i32
    %c0_i32_0 = arith.constant 0 : i32
    %c0_i32_1 = arith.constant 0 : i32
    return %c0_i32, %c0_i32_0 : i32, i32
  }
  func.func @transform_7(%arg0: i32, %arg1: i32) -> (i32, i32) {
    %c0_i32 = arith.constant 0 : i32
    %c0_i32_0 = arith.constant 0 : i32
    %c0_i32_1 = arith.constant 0 : i32
    return %c0_i32, %c0_i32_0 : i32, i32
  }
  func.func @transform_8(%arg0: i32, %arg1: i32) -> (i32, i32) {
    %c0_i32 = arith.constant 0 : i32
    %c0_i32_0 = arith.constant 0 : i32
    %c0_i32_1 = arith.constant 0 : i32
    return %c0_i32, %c0_i32_0 : i32, i32
  }
  func.func @transform_9(%arg0: i32, %arg1: i32) -> (i32, i32, i32) {
    %c0_i32 = arith.constant 0 : i32
    %c0_i32_0 = arith.constant 0 : i32
    return %arg0, %c0_i32, %arg1 : i32, i32, i32
  }
}

</mosaic_0001>

<bundles_post_ra>
// kernel: tpu_custom_call.1
= control target key start
LH: loop header
LB: loop body
LE: loop exit
PB: predicated region body
PF: predicated region fallthrough
CT: control target
= control target key end

     0   :  { %s2459_s0 = inlined_call_operand.hbm [shape: f32[2,4,256], index: 0, kind: input, shape index: {}]   ;;  %s2460_s1 = inlined_call_operand.hbm [shape: f32[2,1,256], index: 1, kind: input, shape index: {}]   ;;  %s2461_s2 = inlined_call_operand.hbm [shape: f32[2,1,256], index: 2, kind: input, shape index: {}]   ;;  %s2462_s3 = inlined_call_operand.hbm [shape: f32[2,1,256], index: 3, kind: input, shape index: {}]   ;;  %s2463_s4 = inlined_call_operand.hbm [shape: bf16[32,4], index: 4, kind: input, shape index: {}]   ;;  %s2464_s5 = inlined_call_operand.hbm [shape: f32[32,1], index: 5, kind: input, shape index: {}]   ;;  %s2465_s6 = inlined_call_operand.hbm [shape: f32[32,1], index: 6, kind: input, shape index: {}]   ;;  %s2466_s7 = inlined_call_operand.hbm [shape: bf16[3,32], index: 7, kind: input, shape index: {}]   ;;  %s2467_s8 = inlined_call_operand.hbm [shape: f32[3,1], index: 8, kind: input, shape index: {}]   ;;  %s2468_s9 = inlined_call_operand.hbm [shape: bf16[2,3,256], index: 9, kind: output, shape index: {}]  }
   0x1   :  { %2493 = sst [smem:[#allocation34_spill]] %s2460_s1 }
   0x2   :  { %2494 = sst [smem:[#allocation35_spill]] %s2463_s4 }
   0x3   :  { %2495 = sst [smem:[#allocation36_spill]] %s2464_s5 }
   0x4   :  { %2496 = sst [smem:[#allocation37_spill]] %s2466_s7 }
   0x5   :  { %2497 = sst [smem:[#allocation38_spill]] %s2468_s9 }
   0x6   :  { %14 = vsyncpa [#allocation4], 0 }
   0x7   :  { %16 = vsyncpa [#allocation4 + $0x1], 0 }
   0x8   :  { %17 = vsyncpa [#allocation7], 0 }
   0x9   :  { %19 = vsyncpa [#allocation7 + $0x1], 0 }
   0xa   :  { %20 = vsyncpa [#allocation10], 0 }
   0xb   :  { %22 = vsyncpa [#allocation10 + $0x1], 0 }
   0xc   :  { %23 = vsyncpa [#allocation13], 0 }
   0xd   :  { %24 = vsyncpa [#allocation16], 0 }
   0xe   :  { %25 = vsyncpa [#allocation5], 0 }
   0xf   :  { %27 = vsyncpa [#allocation5 + $0x1], 0  ;;  %s1968_s30 = smov 0   ;;  %s1970_s10 = smov 0  }
  0x10   :  { %s1972_s11 = smov 0   ;;  %s1974_s12 = smov 0  }
  0x11   :  { %s1976_s13 = smov 0   ;;  %s1978_s14 = smov 0  }
  0x12 LB: > { %2498 = sst [smem:[#allocation26_spill]] %s1873_s30  ;;  %s1999_s15 = sadd.s32 4294967295, %s1893_s14   ;;  %s1893_s14 = sphi %s1978_s14, %s33_s14   ;;  %s1889_s13 = sphi %s1976_s13, %s2555_s13   ;;  %s1885_s12 = sphi %s1974_s12, %s2554_s12   ;;  %s1881_s11 = sphi %s1972_s11, %s2550_s11   ;;  %s1877_s10 = sphi %s1970_s10, %s2553_s10   ;;  %s1873_s30 = sphi %s1968_s30, %s2552_s30  }
  0x13   : > { %2499 = sst [smem:[#allocation27_spill]] %s1881_s11  ;;  %p1333_p0 = scmp.ge.s32.totalorder %s1893_s14, 1 }
  0x14   : > { %2500 = sst [smem:[#allocation28_spill]] %s1885_s12  ;;  %p2470_p1 = scmp.eq.s32.totalorder %s1999_s15, 0 }
  0x15   : > { %2501 = sst [smem:[#allocation29_spill]] %s1999_s15  ;;  %p307_p2 = scmp.lt.s32.totalorder %s1893_s14, 3 }
  0x16   : > { %s1895_s17 = smov [#allocation11]   ;;  %s1896_s20 = smov [#allocation12]  }
  0x17   : > { %p2004_p3 = pnand %p1333_p0, %p307_p2  ;;  %s319_s18 = sshll.u32 %s1895_s17, 4  ;;  %s2008_s18 = int_to_ptr.vmem [resolvable:$true] %s319_s18 }
  0x18   : > { %s332_s21 = sshll.u32 %s1896_s20, 4  ;;  %s2504_s4 = sld [smem:[#allocation35_spill]]  ;;  %s2019_s21 = int_to_ptr.vmem [resolvable:$true] %s332_s21 }
  0x19   : > { %s2502_s16 = scalar_select %p2004_p3, 1, 0 }
  0x1a   : > { %p1411_p4 = pneg %p2004_p3 }
  0x1c   : > { %p2015_p6 = pnand %p1411_p4, %p2470_p1 }
  0x1e   : > { %s2503_s19 = scalar_select %p2015_p6, 1, 0 }
  0x1f   : > { %s1531_s24 = scalar_lea.hbm %s2504_s4, 256  ;;  %p2029_p8 = pneg %p2015_p6 }
  0x20   : > { %p1532_p7 = scmp.ne.s32.totalorder %s2504_s4, %s1531_s24  ;;  %p1538_p11 = scmp.lt.u32.totalorder %s1531_s24, %s2504_s4 }
  0x21   : > { %s2505_s27 = scalar_select %p2029_p8, 1, 0 }
  0x22   : > { %p1534_p9 = pnand %p2029_p8, %p1532_p7 }
  0x24   : > { %p1535_p10 = pneg %p1534_p9 }
  0x26   : > { %p1540_p12 = pnand %p1538_p11, %p1535_p10 }
  0x28   : > { %1543 = shalt.err (!%p1540_p12)
}
  0x29   : > { %s1544_s17 = scalar_lea.vmem %s2008_s18, 256  ;;  %p1552_p4 = scmp.lt.s32.totalorder %s2008_s18, %s2008_s18 }
  0x2a   : > { %p1545_p13 = scmp.ne.s32.totalorder %s2008_s18, %s1544_s17  ;;  %p1553_p5 = scmp.lt.s32.totalorder %s1544_s17, %s1544_s17 }
  0x2c   : > { %p1547_p0 = pnand %p1545_p13, %p2029_p8  ;;  %p1554_p7 = por %p1553_p5, %p1552_p4 }
  0x2e   : > { %p1548_p2 = pneg %p1547_p0 }
  0x30   : > { %p1555_p9 = pnand %p1554_p7, %p1548_p2 }
  0x32   : > { %1558 = shalt.err (!%p1555_p9)
}
  0x33   : > { %s1897_s20 = smov 64   ;;  %s1898_s22 = smov 4  }
  0x34   : > { %1414 = dma.hbm_to_vmem [thread:$0]  (!%p2015_p6), %s2504_s4, 256, %s2008_s18, [#allocation10], %s1897_s20, %s1897_s20, %s1898_s22  }
  0x35   : > { %s2506_s5 = sld [smem:[#allocation36_spill]] }
  0x3b   : > { %s1559_s28 = scalar_lea.hbm %s2506_s5, 512 }
  0x3c   : > { %p1560_p5 = scmp.ne.s32.totalorder %s2506_s5, %s1559_s28  ;;  %p1566_p12 = scmp.lt.u32.totalorder %s1559_s28, %s2506_s5 }
  0x3e   : > { %p1562_p10 = pnand %p1560_p5, %p2029_p8 }
  0x40   : > { %p1563_p11 = pneg %p1562_p10 }
  0x42   : > { %p1568_p13 = pnand %p1566_p12, %p1563_p11 }
  0x44   : > { %1571 = shalt.err (!%p1568_p13)
}
  0x45   : > { %s1572_s18 = scalar_lea.vmem %s2019_s21, 512  ;;  %p1580_p7 = scmp.lt.s32.totalorder %s2019_s21, %s2019_s21 }
  0x46   : > { %p1573_p0 = scmp.ne.s32.totalorder %s2019_s21, %s1572_s18  ;;  %p1581_p9 = scmp.lt.s32.totalorder %s1572_s18, %s1572_s18 }
  0x48   : > { %p1575_p2 = pnand %p1573_p0, %p2029_p8  ;;  %p1582_p5 = por %p1581_p9, %p1580_p7 }
  0x4a   : > { %p1576_p4 = pneg %p1575_p2 }
  0x4c   : > { %p1583_p10 = pnand %p1582_p5, %p1576_p4 }
  0x4e   : > { %1586 = shalt.err (!%p1583_p10)
}
  0x4f   : > { %s2472_s9 = smov 128   ;;  %s2473_s12 = smov 8  }
  0x50   : > { %1417 = dma.hbm_to_vmem [thread:$0]  (!%p2015_p6), %s2506_s5, 512, %s2019_s21, [#allocation13], %s2472_s9, %s2472_s9, %s2473_s12  }
  0x51   : > { %s1901_s23 = smov [#allocation15]   ;;  %s2507_s7 = sld [smem:[#allocation37_spill]] }
  0x52   : > { %s359_s24 = sshll.u32 %s1901_s23, 4  ;;  %s360_s24 = int_to_ptr.vmem [resolvable:$true] %s359_s24 }
  0x57   : > { %s1587_s28 = scalar_lea.hbm %s2507_s7, 32 }
  0x58   : > { %p1588_p11 = scmp.ne.s32.totalorder %s2507_s7, %s1587_s28  ;;  %p1594_p0 = scmp.lt.u32.totalorder %s1587_s28, %s2507_s7 }
  0x5a   : > { %p1590_p12 = pnand %p1588_p11, %p2029_p8 }
  0x5c   : > { %p1591_p13 = pneg %p1590_p12 }
  0x5e   : > { %p1596_p2 = pnand %p1594_p0, %p1591_p13 }
  0x60   : > { %1599 = shalt.err (!%p1596_p2)
}
  0x61   : > { %s1600_s21 = scalar_lea.vmem %s360_s24, 32  ;;  %p1608_p5 = scmp.lt.s32.totalorder %s360_s24, %s360_s24 }
  0x62   : > { %p1601_p4 = scmp.ne.s32.totalorder %s360_s24, %s1600_s21  ;;  %p1609_p10 = scmp.lt.s32.totalorder %s1600_s21, %s1600_s21 }
  0x64   : > { %p1603_p7 = pnand %p1601_p4, %p2029_p8  ;;  %p1610_p1 = por %p1609_p10, %p1608_p5 }
  0x66   : > { %p1604_p9 = pneg %p1603_p7 }
  0x68   : > { %p1611_p3 = pnand %p1610_p1, %p1604_p9 }
  0x6a   : > { %1614 = shalt.err (!%p1611_p3)
}
  0x6b   : > { %1423 = dma.hbm_to_vmem [thread:$0]  (!%p2015_p6), %s2507_s7, 32, %s360_s24, [#allocation16]  }
  0x6c   : > { %s1332_s4 = sadd.s32 4294967294, %s1893_s14   ;;  %s45_s23 = sadd.s32 1, %s1889_s13 }
  0x6d   : > { %s54_s25 = sadd.s32 1, %s1881_s11  ;;  %p47_p1 = scmp.ge.s32.totalorder %s45_s23, 2 }
  0x6e   : > { %p61_p3 = scmp.ne.s32.totalorder %s1881_s11, %s1877_s10  ;;  %p62_p11 = scmp.eq.s32.totalorder %s1893_s14, 0 }
  0x6f   : > { %p67_p12 = scmp.ne.s32.totalorder %s1877_s10, %s1873_s30  ;;  %s2557_s23 = smov (%p47_p1, %s45_s23), 0 }
  0x70   : > { %2508 = sst [smem:[#allocation30_spill]] %s2557_s23  ;;  %p63_p13 = por %p62_p11, %p61_p3 }
  0x71   : > { %p2509_p0 = scmp.eq.s32.totalorder %s1999_s15, 0  ;;  %s49_s24 = ssub.s32 %s1889_s13, %s2557_s23 }
  0x72   : > { %p294_p4 = scmp.eq.s32.totalorder %s1999_s15, 1  ;;  %p52_p7 = scmp.eq.s32.totalorder %s49_s24, 0 }
  0x73   : > { %p2106_p2 = por %p2509_p0, %p67_p12  ;;  %p300_p9 = scmp.eq.s32.totalorder %s1332_s4, 1 }
  0x74   : > { %p2113_p5 = por %p294_p4, %p61_p3  ;;  %p1449_p10 = scmp.lt.s32.totalorder %s1893_s14, 2 }
  0x75   : > { %s2510_s26 = scalar_select %p2106_p2, 1, 0 }
  0x76   : > { %s2511_s28 = scalar_select %p2113_p5, 1, 0 }
  0x77   : > { %s2119_s29 = scalar_select %p52_p7, %s1881_s11, %s54_s25  }
  0x78   : > { %2512 = sst [smem:[#allocation31_spill]] %s2511_s28  ;;  %p2121_p1 = por %p300_p9, %p67_p12 }
  0x79   : > { %2513 = sst [smem:[#allocation32_spill]] %s2119_s29  ;;  %s2126_s18 = sand.u32 1, %s1881_s11  }
  0x7a   : > { %s2514_s17 = scalar_select %p2121_p1, 1, 0 }
  0x7b   : > { %p2128_p11 = pnand %p1449_p10, %p63_p13  ;;  %s2478_s20 = sand.u32 1, %s1893_s14  }
  0x7c   : > { %2515 = sst [smem:[#allocation33_spill]] %s2514_s17  ;;  %s2134_s22 = sshll.u32 %s2126_s18, 1 }
  0x7d   : > { %s2516_s21 = scalar_select %p2128_p11, 1, 0 }
  0x7e   : > { %s2137_s4 = sshll.u32 %s1889_s13, 5  ;;  %s406_s25 = scalar_lea.vmem [#allocation6], %s2134_s22 }
  0x7f   : > { %s416_s24 = sshll.u32 %s406_s25, 4  ;;  %s2517_s1 = sld [smem:[#allocation34_spill]]  ;;  %s2146_s24 = int_to_ptr.vmem [resolvable:$true] %s416_s24 }
  0x80   : > { %s2150_s7 = scalar_lea.sflag [#allocation7], %s2478_s20  ;;  %p2156_p12 = pneg %p2128_p11 }
  0x82   : > { %s2518_s29 = scalar_select %p2156_p12, 1, 0 }
  0x85   : > { %s2144_s5 = scalar_lea.hbm %s2517_s1, %s2137_s4  ;;  %s1620_s25 = scalar_lea.hbm %s2517_s1, 64 }
  0x86   : > { %s1615_s23 = scalar_lea.hbm %s2144_s5, 32  ;;  %p1621_p4 = scmp.lt.u32.totalorder %s2144_s5, %s2517_s1 }
  0x87   : > { %p1616_p3 = scmp.ne.s32.totalorder %s2144_s5, %s1615_s23  ;;  %p1622_p7 = scmp.lt.u32.totalorder %s1620_s25, %s1615_s23 }
  0x88   : > { %p1624_p10 = scmp.lt.u32.totalorder %s1615_s23, %s2144_s5 }
  0x89   : > { %p1618_p13 = pnand %p2156_p12, %p1616_p3  ;;  %p1623_p9 = por %p1622_p7, %p1621_p4 }
  0x8b   : > { %p1619_p0 = pneg %p1618_p13  ;;  %p1625_p1 = por %p1624_p10, %p1623_p9 }
  0x8d   : > { %p1626_p5 = pnand %p1625_p1, %p1619_p0 }
  0x8f   : > { %1629 = shalt.err (!%p1626_p5)
}
  0x90   : > { %s1630_s20 = scalar_lea.vmem %s2146_s24, 32  ;;  %s1902_s9 = smov [#allocation6]  }
  0x91   : > { %p1631_p3 = scmp.ne.s32.totalorder %s2146_s24, %s1630_s20  ;;  %s1635_s12 = sshll.u32 %s1902_s9, 4  ;;  %s1636_s12 = int_to_ptr.vmem [resolvable:$false] %s1635_s12 }
  0x92   : > { %s1637_s11 = scalar_lea.vmem %s1636_s12, 64  ;;  %p1638_p6 = scmp.lt.s32.totalorder %s2146_s24, %s1636_s12 }
  0x93   : > { %p1633_p13 = pnand %p1631_p3, %p2156_p12  ;;  %p1639_p8 = scmp.lt.s32.totalorder %s1637_s11, %s1630_s20 }
  0x95   : > { %p1634_p2 = pneg %p1633_p13  ;;  %p1640_p4 = por %p1639_p8, %p1638_p6 }
  0x97   : > { %p1641_p7 = pnand %p1640_p4, %p1634_p2 }
  0x99   : > { %1644 = shalt.err (!%p1641_p7)
}
  0x9a   : > { %1433 = dma.hbm_to_vmem [thread:$0]  (!%p2128_p11), %s2144_s5, 32, %s2146_s24, %s2150_s7  }
  0x9b   : > { %s1903_s23 = smov [#allocation14]   ;;  %s1904_s25 = smov [#allocation17]  }
  0x9c   : > { %s345_s17 = sshll.u32 %s1903_s23, 4  ;;  %s370_s1 = sshll.u32 %s1904_s25, 4  ;;  %s346_s17 = int_to_ptr.vmem [resolvable:$true] %s345_s17  ;;  %s371_s1 = int_to_ptr.vmem [resolvable:$true] %s370_s1 }
  0x9d   : > { %s1645_s12 = scalar_lea.hbm %s2465_s6, 512  ;;  %p2519_p8 = scmp.ne.s32.totalorder %s2505_s27, 0 }
  0x9e   : > { %p1646_p6 = scmp.ne.s32.totalorder %s2465_s6, %s1645_s12  ;;  %p1652_p1 = scmp.lt.u32.totalorder %s1645_s12, %s2465_s6 }
  0xa0   : > { %p1648_p2 = pnand %p1646_p6, %p2519_p8 }
  0xa2   : > { %p1649_p5 = pneg %p1648_p2 }
  0xa4   : > { %p1654_p0 = pnand %p1652_p1, %p1649_p5 }
  0xa6   : > { %1657 = shalt.err (!%p1654_p0)
}
  0xa7   : > { %s1658_s5 = scalar_lea.vmem %s346_s17, 512  ;;  %p1666_p13 = scmp.lt.s32.totalorder %s346_s17, %s346_s17 }
  0xa8   : > { %p1659_p9 = scmp.ne.s32.totalorder %s346_s17, %s1658_s5  ;;  %p1667_p4 = scmp.lt.s32.totalorder %s1658_s5, %s1658_s5 }
  0xaa   : > { %p1661_p10 = pnand %p1659_p9, %p2519_p8  ;;  %p1668_p7 = por %p1667_p4, %p1666_p13 }
  0xac   : > { %p1662_p3 = pneg %p1661_p10 }
  0xae   : > { %p1669_p11 = pnand %p1668_p7, %p1662_p3 }
  0xb0   : > { %1672 = shalt.err (!%p1669_p11)
}
  0xb1   : > { %p2520_p6 = scmp.ne.s32.totalorder %s2503_s19, 0  ;;  %s2521_s30 = smov 8  }
  0xb2   : > { %s2522_s24 = smov 128   ;;  %s1673_s9 = scalar_lea.hbm %s2467_s8, 64 }
  0xb3   : > { %1420 = dma.hbm_to_vmem [thread:$0]  (!%p2520_p6), %s2465_s6, 512, %s346_s17, [#allocation13], %s2522_s24, %s2522_s24, %s2521_s30  }
  0xb4   : > { %p1674_p2 = scmp.ne.s32.totalorder %s2467_s8, %s1673_s9  ;;  %p1680_p1 = scmp.lt.u32.totalorder %s1673_s9, %s2467_s8 }
  0xb6   : > { %p1676_p11 = pnand %p1674_p2, %p2519_p8 }
  0xb8   : > { %p1677_p5 = pneg %p1676_p11 }
  0xba   : > { %p1682_p0 = pnand %p1680_p1, %p1677_p5 }
  0xbc   : > { %1685 = shalt.err (!%p1682_p0)
}
  0xbd   : > { %s1686_s15 = scalar_lea.vmem %s371_s1, 64  ;;  %p1694_p13 = scmp.lt.s32.totalorder %s371_s1, %s371_s1 }
  0xbe   : > { %p1687_p9 = scmp.ne.s32.totalorder %s371_s1, %s1686_s15  ;;  %p1695_p4 = scmp.lt.s32.totalorder %s1686_s15, %s1686_s15 }
  0xc0   : > { %p1689_p10 = pnand %p1687_p9, %p2519_p8  ;;  %p1696_p7 = por %p1695_p4, %p1694_p13 }
  0xc2   : > { %p1690_p3 = pneg %p1689_p10 }
  0xc4   : > { %p1697_p12 = pnand %p1696_p7, %p1690_p3 }
  0xc6   : > { %1700 = shalt.err (!%p1697_p12)
}
  0xc7   : > { %1426 = dma.hbm_to_vmem [thread:$0]  (!%p2520_p6), %s2467_s8, 64, %s371_s1, [#allocation16]  }
  0xc8   : > { %s1340_s24 = sshll.u32 %s2126_s18, 3  ;;  %s1376_s27 = sshll.u32 %s1889_s13, 7 }
  0xc9   : > { %s2224_s25 = scalar_lea.hbm %s2459_s0, %s1376_s27  ;;  %s385_s19 = scalar_lea.vmem [#allocation3], %s1340_s24 }
  0xca   : > { %s395_s9 = sshll.u32 %s385_s19, 4  ;;  %s2232_s11 = scalar_lea.hbm %s2461_s2, %s2137_s4  ;;  %s2226_s9 = int_to_ptr.vmem [resolvable:$true] %s395_s9 }
  0xcb   : > { %s382_s1 = scalar_lea.sflag [#allocation4], %s2126_s18  ;;  %s1701_s5 = scalar_lea.hbm %s2224_s25, 128 }
  0xcc   : > { %p1702_p12 = scmp.ne.s32.totalorder %s2224_s25, %s1701_s5  ;;  %p2523_p8 = scmp.ne.s32.totalorder %s2518_s29, 0 }
  0xcd   : > { %s1706_s30 = scalar_lea.hbm %s2459_s0, 256  ;;  %p1707_p11 = scmp.lt.u32.totalorder %s2224_s25, %s2459_s0 }
  0xce   : > { %p1704_p6 = pnand %p1702_p12, %p2523_p8  ;;  %p1708_p5 = scmp.lt.u32.totalorder %s1706_s30, %s1701_s5 }
  0xcf   : > { %p1710_p0 = scmp.lt.u32.totalorder %s1701_s5, %s2224_s25 }
  0xd0   : > { %p1705_p2 = pneg %p1704_p6  ;;  %p1709_p1 = por %p1708_p5, %p1707_p11 }
  0xd2   : > { %p1711_p9 = por %p1710_p0, %p1709_p1 }
  0xd4   : > { %p1712_p10 = pnand %p1711_p9, %p1705_p2 }
  0xd6   : > { %1715 = shalt.err (!%p1712_p10)
}
  0xd7   : > { %s1716_s18 = scalar_lea.vmem %s2226_s9, 128  ;;  %s1905_s28 = smov [#allocation3]  }
  0xd8   : > { %p1717_p3 = scmp.ne.s32.totalorder %s2226_s9, %s1716_s18  ;;  %s1721_s23 = sshll.u32 %s1905_s28, 4  ;;  %s1722_s23 = int_to_ptr.vmem [resolvable:$false] %s1721_s23 }
  0xd9   : > { %s1723_s19 = scalar_lea.vmem %s1722_s23, 256  ;;  %p1724_p7 = scmp.lt.s32.totalorder %s2226_s9, %s1722_s23 }
  0xda   : > { %p1719_p13 = pnand %p1717_p3, %p2523_p8  ;;  %p1725_p12 = scmp.lt.s32.totalorder %s1723_s19, %s1716_s18 }
  0xdc   : > { %p1720_p4 = pneg %p1719_p13  ;;  %p1726_p6 = por %p1725_p12, %p1724_p7 }
  0xde   : > { %p1727_p11 = pnand %p1726_p6, %p1720_p4 }
  0xe0   : > { %1730 = shalt.err (!%p1727_p11)
}
  0xe1   : > { %p2524_p2 = scmp.ne.s32.totalorder %s2516_s21, 0  ;;  %s427_s12 = scalar_lea.vmem [#allocation8], %s2134_s22 }
  0xe2   : > { %s440_s20 = sshll.u32 %s427_s12, 4  ;;  %s2261_s17 = scalar_lea.hbm %s2462_s3, %s2137_s4  ;;  %s441_s20 = int_to_ptr.vmem [resolvable:$true] %s440_s20 }
  0xe3   : > { %1430 = dma.hbm_to_vmem [thread:$0]  (!%p2524_p2), %s2224_s25, 128, %s2226_s9, %s382_s1  }
  0xe4   : > { %s1731_s30 = scalar_lea.hbm %s2232_s11, 32  ;;  %s1736_s18 = scalar_lea.hbm %s2461_s2, 64 }
  0xe5   : > { %p1732_p5 = scmp.ne.s32.totalorder %s2232_s11, %s1731_s30  ;;  %p1737_p9 = scmp.lt.u32.totalorder %s2232_s11, %s2461_s2 }
  0xe6   : > { %p1738_p10 = scmp.lt.u32.totalorder %s1736_s18, %s1731_s30  ;;  %p1740_p13 = scmp.lt.u32.totalorder %s1731_s30, %s2232_s11 }
  0xe7   : > { %p1734_p1 = pnand %p1732_p5, %p2523_p8 }
  0xe8   : > { %p1739_p3 = por %p1738_p10, %p1737_p9 }
  0xe9   : > { %p1735_p0 = pneg %p1734_p1 }
  0xea   : > { %p1741_p4 = por %p1740_p13, %p1739_p3 }
  0xec   : > { %p1742_p7 = pnand %p1741_p4, %p1735_p0 }
  0xee   : > { %1745 = shalt.err (!%p1742_p7)
}
  0xef   : > { %s1746_s4 = scalar_lea.vmem %s441_s20, 32  ;;  %s1906_s25 = smov [#allocation8]  }
  0xf0   : > { %p1747_p12 = scmp.ne.s32.totalorder %s441_s20, %s1746_s4  ;;  %s1751_s9 = sshll.u32 %s1906_s25, 4  ;;  %s1752_s9 = int_to_ptr.vmem [resolvable:$false] %s1751_s9 }
  0xf1   : > { %s1753_s1 = scalar_lea.vmem %s1752_s9, 64  ;;  %p1754_p5 = scmp.lt.s32.totalorder %s441_s20, %s1752_s9 }
  0xf2   : > { %p1749_p6 = pnand %p1747_p12, %p2523_p8  ;;  %p1755_p1 = scmp.lt.s32.totalorder %s1753_s1, %s1746_s4 }
  0xf4   : > { %p1750_p11 = pneg %p1749_p6  ;;  %p1756_p2 = por %p1755_p1, %p1754_p5 }
  0xf6   : > { %p1757_p9 = pnand %p1756_p2, %p1750_p11 }
  0xf8   : > { %1760 = shalt.err (!%p1757_p9)
}
  0xf9   : > { %p2525_p10 = scmp.ne.s32.totalorder %s2516_s21, 0  ;;  %s451_s19 = scalar_lea.vmem [#allocation9], %s2134_s22 }
  0xfa   : > { %s464_s12 = sshll.u32 %s451_s19, 4  ;;  %s2526_s5 = sand.u32 1, %s1893_s14   ;;  %s465_s12 = int_to_ptr.vmem [resolvable:$true] %s464_s12 }
  0xfb   : > { %1436 = dma.hbm_to_vmem [thread:$0]  (!%p2525_p10), %s2232_s11, 32, %s441_s20, %s2150_s7  }
  0xfc   : > { %s448_s15 = scalar_lea.sflag [#allocation10], %s2526_s5  ;;  %s1761_s30 = scalar_lea.hbm %s2261_s17, 32 }
  0xfd   : > { %p1762_p2 = scmp.ne.s32.totalorder %s2261_s17, %s1761_s30  ;;  %s1766_s18 = scalar_lea.hbm %s2462_s3, 64 }
  0xfe   : > { %p1767_p13 = scmp.lt.u32.totalorder %s2261_s17, %s2462_s3  ;;  %p1768_p4 = scmp.lt.u32.totalorder %s1766_s18, %s1761_s30 }
  0xff   : > { %p1764_p0 = pnand %p1762_p2, %p2523_p8  ;;  %p1770_p12 = scmp.lt.u32.totalorder %s1761_s30, %s2261_s17 }
 0x100   : > { %p1769_p7 = por %p1768_p4, %p1767_p13 }
 0x101   : > { %p1765_p3 = pneg %p1764_p0 }
 0x102   : > { %p1771_p6 = por %p1770_p12, %p1769_p7 }
 0x104   : > { %p1772_p11 = pnand %p1771_p6, %p1765_p3 }
 0x106   : > { %1775 = shalt.err (!%p1772_p11)
}
 0x107   : > { %s1776_s7 = scalar_lea.vmem %s465_s12, 32  ;;  %s1907_s22 = smov [#allocation9]  }
 0x108   : > { %p1777_p5 = scmp.ne.s32.totalorder %s465_s12, %s1776_s7  ;;  %s1781_s11 = sshll.u32 %s1907_s22, 4  ;;  %s1782_s11 = int_to_ptr.vmem [resolvable:$false] %s1781_s11 }
 0x109   : > { %s1783_s20 = scalar_lea.vmem %s1782_s11, 64  ;;  %p1784_p2 = scmp.lt.s32.totalorder %s465_s12, %s1782_s11 }
 0x10a   : > { %p1779_p1 = pnand %p1777_p5, %p2523_p8  ;;  %p1785_p0 = scmp.lt.s32.totalorder %s1783_s20, %s1776_s7 }
 0x10c   : > { %p1780_p9 = pneg %p1779_p1  ;;  %p1786_p10 = por %p1785_p0, %p1784_p2 }
 0x10e   : > { %p1787_p4 = pnand %p1786_p10, %p1780_p9 }
 0x110   : > { %1790 = shalt.err (!%p1787_p4)
}
 0x111   : > { %p2527_p13 = scmp.ne.s32.totalorder %s2516_s21, 0  ;;  %p2528_p3 = scmp.ne.s32.totalorder %s2502_s16, 0 }
 0x112   : > { %s2304_s29 = sand.u32 (!%p2528_p3), 1, %s1877_s10   ;;  %p2529_p8 = scmp.ne.s32.totalorder (!%p2528_p3), %s2510_s26, 0 }
 0x113   : > { %1439 = dma.hbm_to_vmem [thread:$0]  (!%p2527_p13), %s2261_s17, 32, %s465_s12, %s448_s15  }
 0x114   : > { %473 = sbr.rel (%p2528_p3) target bundleno = 795 (0x31b), region = 56  ;;  %s1353_s4 = sshll.u32 (!%p2528_p3), %s2304_s29, 3 }
 0x115   : > { %s476_s25 = scalar_lea.sflag (!%p2528_p3), [#allocation4], %s2304_s29  ;;  %s2308_s9 = scalar_lea.vmem (!%p2528_p3), [#allocation3], %s1353_s4 }
 0x11b   : > { %1844 = dma.done.wait (%p2529_p8), %s476_s25, 128  }
 0x11c   : > { %1846 = vsyncadd (%p2529_p8), %s476_s25, 4294967168  ;;  %s2530_s21 = sld [smem:[#allocation29_spill]]  ;;  %s2316_s17 = sshll.u32 %s2304_s29, 1 }
 0x11d   : > { %s488_s19 = scalar_lea.vmem [#allocation6], %s2316_s17 }
 0x122   : > { %s484_s16 = sand.u32 1, %s2530_s21  }
 0x123   : > { %s485_s1 = scalar_lea.sflag [#allocation7], %s484_s16 }
 0x124   : > { %1848 = dma.done.wait (%p2529_p8), %s485_s1, 64  }
 0x125   : > { %1850 = vsyncadd (%p2529_p8), %s485_s1, 4294967232  ;;  %s497_s12 = scalar_lea.vmem [#allocation8], %s2316_s17  ;;  %s503_s5 = scalar_lea.sflag [#allocation10], %s484_s16 }
 0x126   : > { %s506_s15 = scalar_lea.vmem [#allocation9], %s2316_s17 }
 0x127   : > { %1852 = dma.done.wait (%p2529_p8), %s503_s5, 32  }
 0x128   : > { %1854 = vsyncadd (%p2529_p8), %s503_s5, 4294967264  ;;  %p2531_p10 = scmp.eq.s32.totalorder %s2530_s21, 0 }
 0x12a   : > { %1856 = dma.done.wait (%p2531_p10), [#allocation10], 256   ;;  %p2532_p7 = pmov %p2531_p10 }
 0x12c   : > { %1858 = vsyncadd (%p2532_p7), [#allocation10], 4294967040  ;;  %p2533_p12 = pmov %p2532_p7 }
 0x12d   : > { %p2534_p6 = pmov %p2532_p7 }
 0x12e   : > { %1860 = dma.done.wait (%p2533_p12), [#allocation13], 1024  }
 0x12f   : > { %1862 = vsyncadd (%p2534_p6), [#allocation13], 4294966272  ;;  %p2535_p11 = pmov %p2534_p6 }
 0x130   : > { %p2536_p5 = pmov %p2534_p6 }
 0x131   : > { %1864 = dma.done.wait (%p2535_p11), [#allocation16], 96  }
 0x132   : > { %1866 = vsyncadd (%p2536_p5), [#allocation16], 4294967200  ;;  %v591_v0 = vlaneseq  ;;  %v1908_v1 = vmov 0   ;;  %vm919_vm0 = vcmask 1041408   ;;  %v849_v7 = vld [vmem:[%s2308_s9] sm:$0xff]  ;;  %s1909_s26 = smov 127  }
 0x133   : > { %958 = vmatprep.mubr.bf16.mxu0 %v1908_v1  ;;  %1523 = vset.pattern.permute.xlu1 %v1908_v1  ;;  %v851_v9 = vcombine.high %v849_v7, %v849_v7  ;;  %v853_v10 = vpack.c.bf16 %v849_v7, %v849_v7  ;;  %v2352_v12 = vld [vmem:[%s488_s19] sm:$0x3]  ;;  %v1525_v18 = vld [vmem:[#allocation11] sm:$0xff]   ;;  %vm912_vm5 = vcmask 31744   ;;  %s1910_s30 = smov 1   ;;  %v1526_v27 = vld [vmem:[#allocation11 + $0x8] sm:$0xff]  }
 0x134   : > { %v2341_v2 = vshrl.u32 %v591_v0, 7  ;;  %1522 = vset.pattern.permute.xlu0 %v1908_v1  ;;  %v592_v3 = vand.u32 127, %v591_v0  ;;  %1074 = vmatprep.mubr.bf16.mxu1 %v1908_v1  ;;  %v589_v23 = vld [vmem:[%s497_s12] sm:$0x3]  ;;  %s1911_s27 = smov 16   ;;  %s1912_s24 = smov 112  }
 0x135   : > { %v854_v13 = vpack.c.bf16 %v851_v9, %v851_v9  ;;  %v921_v14 = vsel %vm919_vm0, %v853_v10, 0  ;;  %v590_v28 = vld [vmem:[%s506_s15] sm:$0x3]  ;;  %v859_v32 = vld [vmem:[#allocation12] sm:$0xff]  ;;  %v861_v33 = vld [vmem:[#allocation12 + $0x10] sm:$0xff]  ;;  %vm631_vm8 = vcmask 7168  }
 0x136   : > { %v593_v4 = vadd.s32 128, %v592_v3  ;;  %v598_v5 = vand.u32 15, %v592_v3  ;;  %v2344_v6 = vsub.s32 0, %v2341_v2  ;;  %v2348_v11 = vsub.s32 1, %v2341_v2  ;;  %v860_v31 = vld [vmem:[#allocation12 + $0x8] sm:$0xff]  ;;  %v862_v34 = vld [vmem:[#allocation12 + $0x18] sm:$0xff] }
 0x137   : > { %1366 = vmatprep.subr.msk.bf16.mxu0 %vm919_vm0, %v854_v13  ;;  %vm773_vm6 = vcmp.ge.s32.totalorder %v592_v3, 16  ;;  %v979_v35 = vld [vmem:[#allocation14] sm:$0xff]  ;;  %v980_v36 = vld [vmem:[#allocation14 + $0x8] sm:$0xff]  ;;  %v981_v37 = vld [vmem:[#allocation14 + $0x10] sm:$0xff]  ;;  %v1913_v40 = vmov 1966171168  }
 0x138   : > { %v605_v8 = vand.u32 15, %v593_v4  ;;  %vm701_vm1 = vcmp.lt.s32.totalorder %v598_v5, 15  ;;  %v622_v15 = vrot.slane %v2352_v12, %v2344_v6  ;;  %v2364_v19 = vrot.slane %v2352_v12, %v2348_v11  ;;  %927 = vmatpush1.bf16.msra.mxu0 %v921_v14  ;;  %v982_v38 = vld [vmem:[#allocation14 + $0x18] sm:$0xff]  ;;  %v1032_v39 = vld [vmem:[#allocation17] sm:$0x7]  ;;  %s2541_s18 = sld [smem:[#allocation28_spill]] }
 0x139   : > { %v2357_v16 = vsel %vm701_vm1, 1, %v1908_v1  ;;  %vm662_vm3 = vcmp.gt.s32.totalorder %v598_v5, 0  ;;  %v781_v25 = vsel %vm773_vm6, 1, %v1908_v1  ;;  %v727_v26 = vrot.slane %v589_v23, %v2348_v11  ;;  %s1362_s28 = sshll.u32 %s2304_s29, 2  ;;  %s2542_s23 = sld [smem:[#allocation31_spill]] }
 0x13a   : > { %vm702_vm2 = vcmp.lt.s32.totalorder %v605_v8, 15  ;;  %635 = vrot.lane.b32.xlu1 %v622_v15, %s1909_s26  ;;  %vm663_vm4 = vcmp.gt.s32.totalorder %v605_v8, 0  ;;  %627 = vrot.lane.b32.xlu0 %v622_v15, %s1910_s30  ;;  %v664_v21 = vsel %vm662_vm3, 1, %v1908_v1  ;;  %vm820_vm7 = vcmp.lt.s32.totalorder %v593_v4, 240  ;;  %s575_s22 = scalar_lea.vmem [#allocation18], %s1362_s28  ;;  %s2543_s25 = sld [smem:[#allocation38_spill]] }
 0x13b   : > { %v2359_v17 = vsel %vm702_vm2, 1, %v1908_v1  ;;  %v665_v22 = vsel %vm663_vm4, 1, %v1908_v1  ;;  %1367 = vmatmul.mubr.msk.bf16.vlgmr.msra.gmra.mrb[0].mxu0 %vm912_vm5, %v1525_v18  ;;  %v828_v29 = vsel %vm820_vm7, 1, %v1908_v1  ;;  %v750_v30 = vrot.slane %v590_v28, %v2344_v6  ;;  %s1125_s11 = sshll.u32 %s575_s22, 4  ;;  %s1109_s21 = scalar_lea.sflag [#allocation5], %s2304_s29  ;;  %s2412_s11 = int_to_ptr.vmem [resolvable:$true] %s1125_s11 }
 0x13c   : > { %v705_v20 = vcombine.low %v2357_v16, %v2359_v17  ;;  %v666_v24 = vcombine.low %v664_v21, %v665_v22  ;;  %968 = vmatprep.mubr.bf16.mxu0 %v1908_v1  ;;  %v647_v41 = vunpack.c.l.s4 %v1913_v40  ;;  %vm639_vm9 = vcmask 1039360   ;;  %s1791_s16 = scalar_lea.vmem %s2412_s11, 64  ;;  %s1917_s17 = smov [#allocation18]  }
 0x13d   : > { %v1914_v58 = vmov 1   ;;  %vm735_vm10 = vcmask 130048   ;;  %vm743_vm3 = vcmask 916480   ;;  %v1915_v28 = vmov 0.0   ;;  %p1792_p1 = scmp.ne.s32.totalorder %s2412_s11, %s1791_s16  ;;  %s1795_s1 = sshll.u32 %s1917_s17, 4  ;;  %s1796_s1 = int_to_ptr.vmem [resolvable:$false] %s1795_s1 }
 0x13e   : > { %637 = vrot.lane.b32.xlu1 %v2364_v19, %s1909_s26  ;;  %629 = vrot.lane.b32.xlu0 %v2364_v19, %s1910_s30  ;;  %v648_v42 = vunpack.c.0.s8 %v647_v41  ;;  %v783_v59 = vcombine.low %v781_v25, %v1914_v58  ;;  %v829_v5 = vcombine.low %v1914_v58, %v828_v29  ;;  %s1380_s7 = sshll.u32 %s2541_s18, 6  ;;  %s1797_s19 = scalar_lea.vmem %s1796_s1, 128 }
 0x13f   : > { %p2544_p9 = scmp.ne.s32.totalorder %s2542_s23, 0  ;;  %p1798_p4 = scmp.lt.s32.totalorder %s2412_s11, %s1796_s1 }
 0x140   : > { %v651_v43 = vsub.s32 %v648_v42, %v2341_v2  ;;  %s2410_s9 = scalar_lea.hbm %s2543_s25, %s1380_s7  ;;  %p1799_p13 = scmp.lt.s32.totalorder %s1797_s19, %s1791_s16 }
 0x141   : > { %p1793_p2 = pnand %p1792_p1, %p2544_p9 }
 0x142   : > { %731 = vrot.lane.b32.xlu1 %v622_v15, %s1911_s27  ;;  %728 = vrot.lane.b32.xlu0 %v727_v26, %s1911_s27  ;;  %v712_v46 = vrot.slane %v705_v20, %v651_v43  ;;  %v673_v47 = vrot.slane %v666_v24, %v651_v43  ;;  %v790_v4 = vrot.slane %v783_v59, %v651_v43  ;;  %p1800_p3 = por %p1799_p13, %p1798_p4 }
 0x143   : > { %1368 = vmatmul.mubr.msk.bf16.gmra.mrb[4].mxu0 %vm912_vm5, %v1526_v27  ;;  %v836_v16 = vrot.slane %v829_v5, %v651_v43  ;;  %p1794_p0 = pneg %p1793_p2 }
 0x144   : > { %v719_v53 = vrot.slane %v712_v46, %v651_v43  ;;  %v680_v56 = vrot.slane %v673_v47, %v651_v43  ;;  %v797_v14 = vrot.slane %v790_v4, %v651_v43 }
 0x145   : > { %v843_v23 = vrot.slane %v836_v16, %v651_v43  ;;  %p1801_p8 = pnand %p1800_p3, %p1794_p0 }
 0x146   : > { %739 = vrot.lane.b32.xlu1 %v622_v15, %s1912_s24  ;;  %733 = vrot.lane.b32.xlu0 %v2364_v19, %s1911_s27  ;;  %vm2383_vm11 = vcmp.ne.s32.totalorder %v719_v53, 0  ;;  %vm681_vm12 = vcmp.ne.s32.totalorder %v680_v56, 0  ;;  %vm798_vm4 = vcmp.ne.s32.totalorder %v797_v14, 0 }
 0x14a   : > { %751 = vrot.lane.b32.xlu1 %v750_v30, %s1912_s24  ;;  %741 = vrot.lane.b32.xlu0 %v2364_v19, %s1912_s24 }
 0x14e   : > { %870 = vperm.xlu1 %1523, %v860_v31   ;;  %865 = vperm.xlu0 %1522, %v859_v32  }
 0x152   : > { %875 = vperm.xlu1 %1523, %v861_v33   ;;  %880 = vperm.xlu0 %1522, %v862_v34  }
 0x156   : > { %985 = vperm.xlu1 %1523, %v979_v35   ;;  %990 = vperm.xlu0 %1522, %v980_v36  }
 0x15a   : > { %995 = vperm.xlu1 %1523, %v981_v37   ;;  %1000 = vperm.xlu0 %1522, %v982_v38  }
 0x15e   : > { %1035 = vperm.xlu1 %1523, %v1032_v39  }
 0x1ac   : > { %v636_v44 = vpop.permute.xlu1 %635  ;;  %v628_v45 = vpop.permute.xlu0 %627 }
 0x1ad   : > { %v634_v48 = vsel %vm631_vm8, %v2352_v12, %v628_v45 }
 0x1b0   : > { %v638_v49 = vpop.permute.xlu1 %637  ;;  %v630_v52 = vpop.permute.xlu0 %629 }
 0x1b1   : > { %v640_v50 = vsel %vm639_vm9, %v636_v44, %v638_v49  ;;  %v643_v51 = vsel %vm639_vm9, %v638_v49, %v2364_v19  ;;  %v632_v55 = vsel %vm631_vm8, %v628_v45, %v630_v52  ;;  %vm844_vm8 = vcmp.ne.s32.totalorder %v843_v23, 0 }
 0x1b2   : > { %v684_v54 = vcombine.low %v640_v50, %v643_v51  ;;  %v645_v57 = vcombine.low %v634_v48, %v632_v55 }
 0x1b4   : > { %v691_v60 = vrot.slane %v684_v54, %v651_v43  ;;  %v732_v61 = vpop.permute.xlu1 %731  ;;  %v652_v62 = vrot.slane %v645_v57, %v651_v43  ;;  %v729_v63 = vpop.permute.xlu0 %728 }
 0x1b5   : > { %v738_v7 = vsel %vm735_vm10, %v729_v63, %v732_v61 }
 0x1b6   : > { %v698_v1 = vrot.slane %v691_v60, %v651_v43  ;;  %v659_v3 = vrot.slane %v652_v62, %v651_v43 }
 0x1b8   : > { %vm700_vm13 = vcmp.ne.f32.partialorder %v2352_v12, %v698_v1  ;;  %v740_v8 = vpop.permute.xlu1 %739  ;;  %vm661_vm15 = vcmp.ne.f32.partialorder %v2352_v12, %v659_v3  ;;  %v734_v9 = vpop.permute.xlu0 %733 }
 0x1b9   : > { %vm721_vm14 = vmand %vm700_vm13, %vm2383_vm11  ;;  %v736_v10 = vsel %vm735_vm10, %v732_v61, %v734_v9  ;;  %vm1099_vm13 = vsmask.f32 1280 }
 0x1ba   : > { %vm682_vm1 = vmand %vm661_vm15, %vm681_vm12  ;;  %v756_v15 = vcombine.low %v738_v7, %v736_v10  ;;  %vm1038_vm12 = vcmask 261120   ;;  %vm1102_vm15 = vsmask.f32 3328 }
 0x1bb   : > { %vm2393_vm2 = vmor %vm682_vm1, %vm721_vm14  ;;  %vm1101_vm14 = vcmask 1043458  }
 0x1bc   : > { %v752_v17 = vpop.permute.xlu1 %751  ;;  %v763_v18 = vrot.slane %v756_v15, %v651_v43  ;;  %v742_v19 = vpop.permute.xlu0 %741  ;;  %vm1100_vm1 = vmand %vm919_vm0, %vm1099_vm13 }
 0x1bd   : > { %v744_v20 = vsel %vm743_vm3, %v740_v8, %v742_v19  ;;  %v754_v21 = vsel %vm743_vm3, %v742_v19, %v752_v17 }
 0x1be   : > { %v770_v22 = vrot.slane %v763_v18, %v651_v43  ;;  %v802_v24 = vcombine.low %v744_v20, %v754_v21  ;;  %v1027_v20 = vld [vmem:[#allocation15] sm:$0x3] }
 0x1c0   : > { %vm772_vm5 = vcmp.ne.f32.partialorder %v2352_v12, %v770_v22  ;;  %v809_v25 = vrot.slane %v802_v24, %v651_v43 }
 0x1c1   : > { %vm799_vm6 = vmand %vm772_vm5, %vm798_vm4 }
 0x1c2   : > { %vm800_vm7 = vmor %vm2393_vm2, %vm799_vm6  ;;  %v816_v26 = vrot.slane %v809_v25, %v651_v43 }
 0x1c3   : > { %vm1103_vm2 = vmand %vm1101_vm14, %vm1102_vm15 }
 0x1c4   : > { %vm818_vm9 = vcmp.ne.f32.partialorder %v2352_v12, %v816_v26  ;;  %vm1104_vm3 = vmor %vm1103_vm2, %vm1100_vm1 }
 0x1c5   : > { %vm845_vm10 = vmand %vm818_vm9, %vm844_vm8 }
 0x1c6   : > { %vm846_vm11 = vmor %vm800_vm7, %vm845_vm10 }
 0x1c7   : > { %v1363_v29 = vsel %vm846_vm11, 1.0, %v1915_v28  ;;  %v1916_v28 = vmov 1983009808  }
 0x1c8   : > { %v887_v31 = vrot.slane %v1363_v29, %v2344_v6  ;;  %v891_v32 = vrot.slane %v1363_v29, %v2348_v11  ;;  %v1091_v29 = vunpack.c.l.s4 %v1916_v28 }
 0x1cd   : > { %v871_v27 = vpop.permute.xlu1 %870  ;;  %v866_v30 = vpop.permute.xlu0 %865 }
 0x1ce   : > { %v894_v34 = vmul.f32 %v887_v31, %v866_v30  ;;  %v895_v35 = vmul.f32 %v891_v32, %v866_v30  ;;  %v896_v38 = vmul.f32 %v887_v31, %v871_v27  ;;  %v897_v41 = vmul.f32 %v891_v32, %v871_v27 }
 0x1cf   : > { %v1092_v30 = vunpack.c.0.s8 %v1091_v29 }
 0x1d1   : > { %v876_v33 = vpop.permute.xlu1 %875  ;;  %v881_v36 = vpop.permute.xlu0 %880 }
 0x1d2   : > { %v898_v50 = vmul.f32 %v887_v31, %v876_v33  ;;  %v899_v53 = vmul.f32 %v891_v32, %v876_v33  ;;  %v900_v57 = vmul.f32 %v887_v31, %v881_v36  ;;  %v901_v61 = vmul.f32 %v891_v32, %v881_v36 }
 0x1d3   : > { %v1095_v32 = vsub.s32 %v1092_v30, %v2341_v2 }
 0x1d5   : > { %v986_v12 = vpop.permute.xlu1 %985  ;;  %v991_v47 = vpop.permute.xlu0 %990 }
 0x1d9   : > { %v996_v62 = vpop.permute.xlu1 %995  ;;  %v1001_v7 = vpop.permute.xlu0 %1000 }
 0x1dd   : > { %v1036_v21 = vpop.permute.xlu1 %1035 }
 0x20e   : > { %v960_v37 = vpop.f32.mrb[0].mxu0 }
 0x20f   : > { %v961_v39 = vadd.f32 %v960_v37, %v894_v34  ;;  %v962_v40 = vpop.f32.mrb[1].mxu0 }
 0x210   : > { %v963_v42 = vadd.f32 %v962_v40, %v895_v35  ;;  %v964_v43 = vpop.f32.mrb[2].mxu0  ;;  %v1105_v35 = vld [vmem:[%s575_s22] sm:$0xf] }
 0x211   : > { %v1003_v44 = vadd.f32 %v986_v12, %v961_v39  ;;  %v965_v45 = vadd.f32 %v964_v43, %v896_v38  ;;  %v966_v46 = vpop.f32.mrb[3].mxu0 }
 0x212   : > { %v967_v48 = vadd.f32 %v966_v46, %v897_v41  ;;  %v1004_v6 = vadd.f32 %v986_v12, %v963_v42 }
 0x213   : > { %v1005_v49 = vadd.f32 %v991_v47, %v965_v45  ;;  %v1011_v51 = vmax.f32 %v1003_v44, 0.0 }
 0x214   : > { %v1006_v11 = vadd.f32 %v991_v47, %v967_v48  ;;  %v1012_v55 = vmax.f32 %v1004_v6, 0.0 }
 0x215   : > { %v1013_v52 = vmax.f32 %v1005_v49, 0.0 }
 0x216   : > { %v970_v54 = vpop.f32.mrb[4].mxu0  ;;  %v1014_v56 = vmax.f32 %v1006_v11, 0.0 }
 0x217   : > { %v971_v58 = vadd.f32 %v970_v54, %v898_v50  ;;  %v972_v59 = vpop.f32.mrb[5].mxu0  ;;  %v1019_v60 = vpack.c.bf16 %v1013_v52, %v1011_v51 }
 0x218   : > { %v973_v63 = vadd.f32 %v972_v59, %v899_v53  ;;  %v974_v0 = vpop.f32.mrb[6].mxu0  ;;  %v1020_v1 = vpack.c.bf16 %v1014_v56, %v1012_v55 }
 0x219   : > { %v1007_v3 = vadd.f32 %v996_v62, %v971_v58  ;;  %v975_v4 = vadd.f32 %v974_v0, %v900_v57  ;;  %v976_v5 = vpop.f32.mrb[7].mxu0 }
 0x21a   : > { %v1008_v8 = vadd.f32 %v996_v62, %v973_v63  ;;  %v977_v9 = vadd.f32 %v976_v5, %v901_v61  ;;  %1042 = vmatprep.subr.bf16.mxu1 %v1020_v1 }
 0x21b   : > { %v1009_v10 = vadd.f32 %v1001_v7, %v975_v4  ;;  %1043 = vmatpush1.bf16.msra.mxu1 %v1019_v60  ;;  %v1015_v14 = vmax.f32 %v1007_v3, 0.0 }
 0x21c   : > { %v1010_v13 = vadd.f32 %v1001_v7, %v977_v9  ;;  %v1016_v16 = vmax.f32 %v1008_v8, 0.0 }
 0x21d   : > { %v1017_v15 = vmax.f32 %v1009_v10, 0.0 }
 0x21e   : > { %v1018_v17 = vmax.f32 %v1010_v13, 0.0 }
 0x21f   : > { %v1021_v18 = vpack.c.bf16 %v1017_v15, %v1015_v14 }
 0x220   : > { %v1022_v19 = vpack.c.bf16 %v1018_v17, %v1016_v16 }
 0x222   : > { %1044 = vmatprep.subr.bf16.mxu1 %v1022_v19 }
 0x223   : > { %1045 = vmatpush1.bf16.msra.mxu1 %v1021_v18 }
 0x226   : > { %1369 = vmatmul.mubr.msk.bf16.vlgmr.msra.gmra.mrb[0].mxu1 %vm1038_vm12, %v1027_v20 }
 0x2f9   : > { %v1076_v22 = vpop.f32.mrb[0].mxu1 }
 0x2fa   : > { %v1077_v23 = vadd.f32 %v1076_v22, %v1036_v21  ;;  %v1078_v24 = vpop.f32.mrb[1].mxu1 }
 0x2fb   : > { %v1079_v25 = vadd.f32 %v1078_v24, %v1036_v21  ;;  %v1080_v26 = vpop.f32.mrb[2].mxu1 }
 0x2fc   : > { %1527 = vtanh.f32 %v1077_v23  ;;  %v1081_v27 = vpop.f32.mrb[3].mxu1 }
 0x2fd   : > { %1529 = vtanh.f32 %v1079_v25 }
 0x306   : > { %v1528_v31 = vpop.eup %1527 }
 0x307   : > { %v1530_v33 = vpop.eup %1529 }
 0x308   : > { %v1370_v34 = vpack.c.bf16 %v1530_v33, %v1528_v31 }
 0x30a   : > { %v1096_v36 = vrot.slane %v1370_v34, %v1095_v32 }
 0x30c   : > { %v1106_v2 = vsel %vm1104_vm3, %v1096_v36, %v1105_v35 }
 0x30d   : > { %1107 = vst [vmem:[%s575_s22] sm:$0xf] %v1106_v2 }
 0x30e   : > { %1804 = shalt.err (!%p1801_p8)
}
 0x30f   : > { %s1805_s29 = scalar_lea.hbm %s2410_s9, 64  ;;  %s1809_s15 = scalar_lea.hbm %s2543_s25, 128 }
 0x310   : > { %p1806_p10 = scmp.ne.s32.totalorder %s2410_s9, %s1805_s29  ;;  %p1810_p6 = scmp.lt.u32.totalorder %s2410_s9, %s2543_s25 }
 0x311   : > { %p1811_p11 = scmp.lt.u32.totalorder %s1809_s15, %s1805_s29  ;;  %p1813_p1 = scmp.lt.u32.totalorder %s1805_s29, %s2410_s9 }
 0x312   : > { %p1807_p7 = pnand %p1806_p10, %p2544_p9 }
 0x313   : > { %p1812_p5 = por %p1811_p11, %p1810_p6 }
 0x314   : > { %p1808_p12 = pneg %p1807_p7 }
 0x315   : > { %p1814_p2 = por %p1813_p1, %p1812_p5 }
 0x317   : > { %p1815_p0 = pnand %p1814_p2, %p1808_p12 }
 0x319   : > { %1818 = shalt.err (!%p1815_p0)
}
 0x31a   : > { %1409 = dma.vmem_to_hbm [thread:$0]  (%p2544_p9), %s2412_s11, 64, %s2410_s9, %s1109_s21  }
 0x31b PF: > { %s2545_s27 = sld [smem:[#allocation26_spill]]  ;;  %s2546_s24 = sld [smem:[#allocation33_spill]] }
 0x31c   : > { %p2548_p13 = scmp.ge.s32.totalorder %s1893_s14, 2 }
 0x321   : > { %s1137_s18 = sand.u32 1, %s2545_s27   ;;  %p2547_p4 = scmp.ne.s32.totalorder %s2546_s24, 0 }
 0x322   : > { %s1138_s28 = scalar_lea.sflag [#allocation5], %s1137_s18 }
 0x323   : > { %p1441_p3 = pnand %p2548_p13, %p2547_p4 }
 0x325   : > { %1868 = dma.done.wait (!%p1441_p3), %s1138_s28, 64  }
 0x326   : > { %1870 = vsyncadd (!%p1441_p3), %s1138_s28, 4294967232  ;;  %s33_s14 = sadd.s32 1, %s1893_s14   ;;  %s2549_s7 = sld [smem:[#allocation27_spill]] }
 0x327   : > { %p30_p8 = scmp.ge.s32.totalorder %s33_s14, 4   ;;  %s2550_s11 = sld [smem:[#allocation32_spill]] }
 0x328   : > { %s2551_s23 = sld [smem:[#allocation30_spill]]  ;;  %s2552_s30 = smov %s1877_s10 }
 0x329   : > { %s2554_s12 = smov %s1889_s13  ;;  %32 = sbr.rel (!%p30_p8) target bundleno = 18 (0x12), region = 158 }
 0x32c   : > { %s2553_s10 = smov %s2549_s7 }
 0x32e   : > { %s2555_s13 = smov %s2551_s23 }
 0x330   :  { %1143 = vsyncpa [#allocation4], 1 }
 0x331   :  { %1145 = vsyncpa [#allocation4 + $0x1], 1 }
 0x332   :  { %1146 = vsyncpa [#allocation7], 1 }
 0x333   :  { %1148 = vsyncpa [#allocation7 + $0x1], 1 }
 0x334   :  { %1149 = vsyncpa [#allocation10], 1 }
 0x335   :  { %1151 = vsyncpa [#allocation10 + $0x1], 1 }
 0x336   :  { %1152 = vsyncpa [#allocation13], 1 }
 0x337   :  { %1153 = vsyncpa [#allocation16], 1 }
 0x338   :  { %1154 = vsyncpa [#allocation5], 1 }
 0x339   :  { %1156 = vsyncpa [#allocation5 + $0x1], 1 }

</bundles_post_ra>
